<compile_context>
chip_gen: v7x
topology: tpu7x:2x2x1
jax: 0.10.0
libtpu: 0.0.40
codegen_flags: <defaults>
</compile_context>

<pallas_src>
import jax
import jax.numpy as jnp
from jax import lax
from jax.experimental import pallas as pl
from jax.experimental.pallas import tpu as pltpu


def _round_up(v, m):
    return ((v + m - 1) // m) * m


def _gelu_exact(x):
    # nn.GELU() default: 0.5 * x * (1 + erf(x / sqrt(2)))
    inv_sqrt2 = 0.7071067811865476
    return 0.5 * x * (1.0 + lax.erf(x * inv_sqrt2))


def _adapter_kernel(x_ref, w1_ref, b1_ref, w2_ref, b2_ref, out_ref):
    # x_ref:  (TM, D)   w1_ref: (D, H)   b1_ref: (1, H)
    # w2_ref: (H, D)    b2_ref: (1, D)   out_ref: (TM, D)
    x = x_ref[...]

    # Linear(dim, 32) + GELU (f32 accumulation on the MXU)
    h = jnp.dot(x, w1_ref[...], preferred_element_type=jnp.float32)
    h = h + b1_ref[...].astype(jnp.float32)
    h = _gelu_exact(h)

    # Feed the MXU its native operand width (bf16 in production; no-op for f32).
    h = h.astype(w2_ref.dtype)

    # Linear(32, dim) + GELU
    p = jnp.dot(h, w2_ref[...], preferred_element_type=jnp.float32)
    p = p + b2_ref[...].astype(jnp.float32)
    p = _gelu_exact(p)

    # residual: promped = x + prompt   (f32 add, cast back to activation dtype)
    out_ref[...] = (x.astype(jnp.float32) + p).astype(out_ref.dtype)


@jax.jit
def _adapter_core(x, w1, b1, w2, b2):
    """x: (B, N, D). Returns x + prompt_learn(x) with the same shape/dtype."""
    B, N, D = x.shape
    H = w1.shape[1]
    M = B * N
    dtype = x.dtype
    itemsize = jnp.dtype(dtype).itemsize

    # Token-tile size from a VMEM budget: ~24 MB for the double-buffered x/out tiles
    # (2 bufs * (in + out) * TM * D * itemsize), capped at 2048 rows. Safe on v7x's
    # 64 MiB VMEM and well under the 48 MiB scoped limit requested below.
    tile_budget = 24 * 1024 * 1024
    tm_max = max(8, (tile_budget // (4 * max(D, 1) * itemsize)) // 8 * 8)
    tm_max = min(tm_max, 2048)
    TM = min(_round_up(M, 8), tm_max)
    grid = (pl.cdiv(M, TM),)   # partial last tile is fine: rows are independent

    x2 = x.reshape(M, D)       # contiguous view; no extra HBM pass
    b1r = b1.reshape(1, H)
    b2r = b2.reshape(1, D)

    w_bytes = (w1.size * jnp.dtype(w1.dtype).itemsize
               + w2.size * jnp.dtype(w2.dtype).itemsize
               + b1.size * jnp.dtype(b1.dtype).itemsize
               + b2.size * jnp.dtype(b2.dtype).itemsize)
    cost = pl.CostEstimate(
        flops=4 * M * D * H,                      # two matmuls
        transcendentals=M * (H + D),              # erf count
        bytes_accessed=2 * M * D * itemsize + w_bytes,
    )

    promped = pl.pallas_call(
        _adapter_kernel,
        out_shape=jax.ShapeDtypeStruct((M, D), dtype),
        grid=grid,
        in_specs=[
            # x tile: pipelined (double-buffered) along the token axis.
            pl.BlockSpec((TM, D), lambda i: (i, 0)),
            # Weights / biases: VMEM-resident, single-buffered (constant index_map).
            pl.BlockSpec((D, H), lambda i: (0, 0), pipeline_mode=pl.Buffered(1)),
            pl.BlockSpec((1, H), lambda i: (0, 0), pipeline_mode=pl.Buffered(1)),
            pl.BlockSpec((H, D), lambda i: (0, 0), pipeline_mode=pl.Buffered(1)),
            pl.BlockSpec((1, D), lambda i: (0, 0), pipeline_mode=pl.Buffered(1)),
        ],
        out_specs=pl.BlockSpec((TM, D), lambda i: (i, 0)),
        compiler_params=pltpu.CompilerParams(
            dimension_semantics=("parallel",),    # independent token tiles
            vmem_limit_bytes=48 * 1024 * 1024,
        ),
        cost_estimate=cost,
    )(x2, w1, b1r, w2, b2r)

    return promped.reshape(B, N, D)


def adapter_forward(x, w1, b1, w2, b2, block_fn=None):
    """Adapter.forward: block(x + prompt_learn(x)); block defaults to identity."""
    promped = _adapter_core(x, w1, b1, w2, b2)
    if block_fn is None:
        block_fn = lambda y: y  # external `blk` not available; identity placeholder
    return block_fn(promped)


def _reference(x, w1, b1, w2, b2):
    h = jax.nn.gelu(x @ w1 + b1.reshape(1, -1), approximate=False)
    p = jax.nn.gelu(h @ w2 + b2.reshape(1, -1), approximate=False)
    return x + p


if __name__ == "__main__":
    key = jax.random.PRNGKey(0)
    B, N, D = 2, 8, 32        # dim = blk.attn.qkv.in_features -> 32 (small synthetic)
    H = 32                    # nn.Linear(dim, 32) hidden width

    kx, k1, kb1, k2, kb2 = jax.random.split(key, 5)
    x = jax.random.normal(kx, (B, N, D), dtype=jnp.float32)

    # Deterministic parameter init (Linear weights stored as (in, out) for x @ W)
    w1 = jax.random.normal(k1, (D, H), dtype=jnp.float32) * (1.0 / jnp.sqrt(D))
    b1 = jax.random.normal(kb1, (1, H), dtype=jnp.float32) * 0.01
    w2 = jax.random.normal(k2, (H, D), dtype=jnp.float32) * (1.0 / jnp.sqrt(H))
    b2 = jax.random.normal(kb2, (1, D), dtype=jnp.float32) * 0.01

    out = adapter_forward(x, w1, b1, w2, b2)
    out = jax.block_until_ready(out)

    ref = _reference(x, w1, b1, w2, b2)
    assert out.shape == (B, N, D)
    assert jnp.allclose(out, ref, atol=1e-5, rtol=1e-5), "mismatch vs reference"

    print("KERNEL_OK")
</pallas_src>

<mosaic_0001>
module attributes {stable_mosaic.version = 11 : i64} {
  func.func @_adapter_kernel(%arg0: i32, %arg1: memref<16x32xf32, #tpu.memory_space<vmem>>, %arg2: memref<32x32xf32, #tpu.memory_space<vmem>>, %arg3: memref<1x32xf32, #tpu.memory_space<vmem>>, %arg4: memref<32x32xf32, #tpu.memory_space<vmem>>, %arg5: memref<1x32xf32, #tpu.memory_space<vmem>>, %arg6: memref<16x32xf32, #tpu.memory_space<vmem>>) attributes {dimension_semantics = [#tpu.dimension_semantics<parallel>], iteration_bounds = array<i64: 1>, scalar_prefetch = 0 : i64, scratch_operands = 0 : i64, tpu.core_type = #tpu.core_type<tc>, window_params = [{transform_indices = @transform_0, window_bounds = array<i64: 16, 32>}, {pipeline_mode = #tpu.pipeline_mode<synchronous>, transform_indices = @transform_1, window_bounds = array<i64: 32, 32>}, {pipeline_mode = #tpu.pipeline_mode<synchronous>, transform_indices = @transform_2, window_bounds = array<i64: 1, 32>}, {pipeline_mode = #tpu.pipeline_mode<synchronous>, transform_indices = @transform_3, window_bounds = array<i64: 32, 32>}, {pipeline_mode = #tpu.pipeline_mode<synchronous>, transform_indices = @transform_4, window_bounds = array<i64: 1, 32>}, {transform_indices = @transform_5, window_bounds = array<i64: 16, 32>}]} {
    %c0 = arith.constant 0 : index
    %c0_0 = arith.constant 0 : index
    %0 = vector.load %arg1[%c0, %c0_0] : memref<16x32xf32, #tpu.memory_space<vmem>>, vector<16x32xf32>
    %c0_1 = arith.constant 0 : index
    %c0_2 = arith.constant 0 : index
    %1 = vector.load %arg2[%c0_1, %c0_2] : memref<32x32xf32, #tpu.memory_space<vmem>>, vector<32x32xf32>
    %cst = arith.constant dense<0.000000e+00> : vector<16x32xf32>
    %2 = tpu.matmul %0, %1, %cst {dimension_numbers = #tpu.dot_dimension_numbers<[1], [0], [0], [1], [0, 0, 1, 1], [], []>} : vector<16x32xf32>, vector<32x32xf32>, vector<16x32xf32> -> vector<16x32xf32>
    %c0_3 = arith.constant 0 : index
    %c0_4 = arith.constant 0 : index
    %3 = vector.load %arg3[%c0_3, %c0_4] : memref<1x32xf32, #tpu.memory_space<vmem>>, vector<1x32xf32>
    %4 = vector.broadcast %3 : vector<1x32xf32> to vector<16x32xf32>
    %5 = arith.addf %2, %4 : vector<16x32xf32>
    %cst_5 = arith.constant 5.000000e-01 : f32
    %6 = vector.broadcast %cst_5 : f32 to vector<16x32xf32>
    %7 = arith.mulf %6, %5 : vector<16x32xf32>
    %cst_6 = arith.constant 0.707106769 : f32
    %8 = vector.broadcast %cst_6 : f32 to vector<16x32xf32>
    %9 = arith.mulf %5, %8 : vector<16x32xf32>
    %10 = math.erf %9 : vector<16x32xf32>
    %cst_7 = arith.constant 1.000000e+00 : f32
    %11 = vector.broadcast %cst_7 : f32 to vector<16x32xf32>
    %12 = arith.addf %11, %10 : vector<16x32xf32>
    %13 = arith.mulf %7, %12 : vector<16x32xf32>
    %c0_8 = arith.constant 0 : index
    %c0_9 = arith.constant 0 : index
    %14 = vector.load %arg4[%c0_8, %c0_9] : memref<32x32xf32, #tpu.memory_space<vmem>>, vector<32x32xf32>
    %cst_10 = arith.constant dense<0.000000e+00> : vector<16x32xf32>
    %15 = tpu.matmul %13, %14, %cst_10 {dimension_numbers = #tpu.dot_dimension_numbers<[1], [0], [0], [1], [0, 0, 1, 1], [], []>} : vector<16x32xf32>, vector<32x32xf32>, vector<16x32xf32> -> vector<16x32xf32>
    %c0_11 = arith.constant 0 : index
    %c0_12 = arith.constant 0 : index
    %16 = vector.load %arg5[%c0_11, %c0_12] : memref<1x32xf32, #tpu.memory_space<vmem>>, vector<1x32xf32>
    %17 = vector.broadcast %16 : vector<1x32xf32> to vector<16x32xf32>
    %18 = arith.addf %15, %17 : vector<16x32xf32>
    %cst_13 = arith.constant 5.000000e-01 : f32
    %19 = vector.broadcast %cst_13 : f32 to vector<16x32xf32>
    %20 = arith.mulf %19, %18 : vector<16x32xf32>
    %cst_14 = arith.constant 0.707106769 : f32
    %21 = vector.broadcast %cst_14 : f32 to vector<16x32xf32>
    %22 = arith.mulf %18, %21 : vector<16x32xf32>
    %23 = math.erf %22 : vector<16x32xf32>
    %cst_15 = arith.constant 1.000000e+00 : f32
    %24 = vector.broadcast %cst_15 : f32 to vector<16x32xf32>
    %25 = arith.addf %24, %23 : vector<16x32xf32>
    %26 = arith.mulf %20, %25 : vector<16x32xf32>
    %27 = arith.addf %0, %26 : vector<16x32xf32>
    %c0_16 = arith.constant 0 : index
    %c0_17 = arith.constant 0 : index
    %28 = vector.load %arg6[%c0_16, %c0_17] : memref<16x32xf32, #tpu.memory_space<vmem>>, vector<16x32xf32>
    tpu.vector_store %arg6[%c0_16, %c0_17], %27 {strides = array<i32>} : memref<16x32xf32, #tpu.memory_space<vmem>>, vector<16x32xf32>,
    return
  }
  func.func @transform_0(%arg0: i32) -> (i32, i32) {
    %c0_i32 = arith.constant 0 : i32
    %c0_i32_0 = arith.constant 0 : i32
    return %arg0, %c0_i32 : i32, i32
  }
  func.func @transform_1(%arg0: i32) -> (i32, i32) {
    %c0_i32 = arith.constant 0 : i32
    %c0_i32_0 = arith.constant 0 : i32
    %c0_i32_1 = arith.constant 0 : i32
    return %c0_i32, %c0_i32_0 : i32, i32
  }
  func.func @transform_2(%arg0: i32) -> (i32, i32) {
    %c0_i32 = arith.constant 0 : i32
    %c0_i32_0 = arith.constant 0 : i32
    %c0_i32_1 = arith.constant 0 : i32
    return %c0_i32, %c0_i32_0 : i32, i32
  }
  func.func @transform_3(%arg0: i32) -> (i32, i32) {
    %c0_i32 = arith.constant 0 : i32
    %c0_i32_0 = arith.constant 0 : i32
    %c0_i32_1 = arith.constant 0 : i32
    return %c0_i32, %c0_i32_0 : i32, i32
  }
  func.func @transform_4(%arg0: i32) -> (i32, i32) {
    %c0_i32 = arith.constant 0 : i32
    %c0_i32_0 = arith.constant 0 : i32
    %c0_i32_1 = arith.constant 0 : i32
    return %c0_i32, %c0_i32_0 : i32, i32
  }
  func.func @transform_5(%arg0: i32) -> (i32, i32) {
    %c0_i32 = arith.constant 0 : i32
    %c0_i32_0 = arith.constant 0 : i32
    return %arg0, %c0_i32 : i32, i32
  }
}

</mosaic_0001>

<bundles_post_ra>
// kernel: _adapter_core.1
= control target key start
LH: loop header
LB: loop body
LE: loop exit
PB: predicated region body
PF: predicated region fallthrough
CT: control target
= control target key end

     0   :  { %10 = vsyncpa [#allocation3], 0  ;;  %s570_s0 = inlined_call_operand.hbm [shape: f32[16,32], index: 0, kind: input, shape index: {}]   ;;  %s571_s1 = inlined_call_operand.hbm [shape: f32[32,32], index: 1, kind: input, shape index: {}]   ;;  %s572_s2 = inlined_call_operand.vmem [shape: f32[1,32], index: 2, kind: input, shape index: {}]   ;;  %s573_s3 = inlined_call_operand.hbm [shape: f32[32,32], index: 3, kind: input, shape index: {}]   ;;  %s574_s4 = inlined_call_operand.vmem [shape: f32[1,32], index: 4, kind: input, shape index: {}]   ;;  %s575_s5 = inlined_call_operand.hbm [shape: f32[16,32], index: 5, kind: output, shape index: {}]  }
   0x1   :  { %11 = vsyncpa [#allocation6], 0 }
   0x2   :  { %12 = vsyncpa [#allocation4], 0  ;;  %s455_s18 = smov [#allocation5]   ;;  %s456_s20 = smov [#allocation2]  }
   0x3   :  { %s30_s19 = sshll.u32 %s455_s18, 4  ;;  %s18_s21 = sshll.u32 %s456_s20, 4  ;;  %s31_s19 = int_to_ptr.vmem [resolvable:$true] %s30_s19  ;;  %s491_s21 = int_to_ptr.vmem [resolvable:$true] %s18_s21 }
   0x4   :  { %s361_s24 = scalar_lea.hbm %s571_s1, 512 }
   0x5   :  { %p362_p0 = scmp.ne.s32.totalorder %s571_s1, %s361_s24  ;;  %p365_p1 = scmp.lt.u32.totalorder %s361_s24, %s571_s1 }
   0x7   :  { %p367_p2 = pnand %p365_p1, %p362_p0 }
   0x9   :  { %370 = shalt.err (!%p367_p2)
}
   0xa   :  { %s371_s29 = scalar_lea.vmem %s31_s19, 512  ;;  %p376_p4 = scmp.lt.s32.totalorder %s31_s19, %s31_s19 }
   0xb   :  { %p372_p3 = scmp.ne.s32.totalorder %s31_s19, %s371_s29  ;;  %p377_p5 = scmp.lt.s32.totalorder %s371_s29, %s371_s29 }
   0xd   :  { %p378_p6 = por %p377_p5, %p376_p4 }
   0xf   :  { %p379_p7 = pnand %p378_p6, %p372_p3 }
  0x11   :  { %382 = shalt.err (!%p379_p7)
}
  0x12   :  { %s457_s30 = smov 128   ;;  %s458_s6 = smov 8  }
  0x13   :  { %36 = dma.hbm_to_vmem [thread:$0]  %s571_s1, 512, %s31_s19, [#allocation6], %s457_s30, %s457_s30, %s458_s6  }
  0x14   :  { %s383_s11 = scalar_lea.hbm %s570_s0, 256 }
  0x15   :  { %p384_p8 = scmp.ne.s32.totalorder %s570_s0, %s383_s11  ;;  %p387_p9 = scmp.lt.u32.totalorder %s383_s11, %s570_s0 }
  0x17   :  { %p389_p10 = pnand %p387_p9, %p384_p8 }
  0x19   :  { %392 = shalt.err (!%p389_p10)
}
  0x1a   :  { %s393_s16 = scalar_lea.vmem %s491_s21, 256  ;;  %p398_p12 = scmp.lt.s32.totalorder %s491_s21, %s491_s21 }
  0x1b   :  { %p394_p11 = scmp.ne.s32.totalorder %s491_s21, %s393_s16  ;;  %p399_p13 = scmp.lt.s32.totalorder %s393_s16, %s393_s16 }
  0x1d   :  { %p400_p0 = por %p399_p13, %p398_p12 }
  0x1f   :  { %p401_p1 = pnand %p400_p0, %p394_p11 }
  0x21   :  { %404 = shalt.err (!%p401_p1)
}
  0x22   :  { %24 = dma.hbm_to_vmem [thread:$0]  %s570_s0, 256, %s491_s21, [#allocation3], %s457_s30, %s457_s30, %s458_s6  }
  0x23   :  { %s459_s18 = smov [#allocation7]   ;;  %s405_s23 = scalar_lea.hbm %s573_s3, 512 }
  0x24   :  { %s44_s19 = sshll.u32 %s459_s18, 4  ;;  %p406_p2 = scmp.ne.s32.totalorder %s573_s3, %s405_s23  ;;  %s45_s19 = int_to_ptr.vmem [resolvable:$true] %s44_s19 }
  0x25   :  { %p409_p3 = scmp.lt.u32.totalorder %s405_s23, %s573_s3 }
  0x27   :  { %p411_p4 = pnand %p409_p3, %p406_p2 }
  0x29   :  { %414 = shalt.err (!%p411_p4)
}
  0x2a   :  { %s415_s28 = scalar_lea.vmem %s45_s19, 512  ;;  %p420_p6 = scmp.lt.s32.totalorder %s45_s19, %s45_s19 }
  0x2b   :  { %p416_p5 = scmp.ne.s32.totalorder %s45_s19, %s415_s28  ;;  %p421_p7 = scmp.lt.s32.totalorder %s415_s28, %s415_s28 }
  0x2d   :  { %p422_p8 = por %p421_p7, %p420_p6 }
  0x2f   :  { %p423_p9 = pnand %p422_p8, %p416_p5 }
  0x31   :  { %426 = shalt.err (!%p423_p9)
}
  0x32   :  { %50 = dma.hbm_to_vmem [thread:$0]  %s573_s3, 512, %s45_s19, [#allocation6], %s457_s30, %s457_s30, %s458_s6  }
  0x33   :  { %449 = dma.done.wait [#allocation3], 256  }
  0x34   :  { %450 = vsyncadd [#allocation3], 4294967040 }
  0x35   :  { %451 = dma.done.wait [#allocation6], 1024  }
  0x36   :  { %452 = vsyncadd [#allocation6], 4294966272  ;;  %vm75_vm0 = vcmask 261120   ;;  %v64_v0 = vld [vmem:[#allocation5] sm:$0xff]  ;;  %v65_v1 = vld [vmem:[#allocation5 + $0x8] sm:$0xff]  ;;  %s460_s8 = smov [#allocation8]  }
  0x37   :  { %v66_v2 = vld [vmem:[#allocation5 + $0x10] sm:$0xff]  ;;  %v331_v3 = vpack.c.bf16 %v65_v1, %v64_v0  ;;  %v67_v4 = vld [vmem:[#allocation5 + $0x18] sm:$0xff]  ;;  %v167_v8 = vld [vmem:[#allocation7] sm:$0xff]  ;;  %s278_s9 = sshll.u32 %s460_s8, 4  ;;  %s279_s9 = int_to_ptr.vmem [resolvable:$true] %s278_s9 }
  0x38   :  { %v62_v5 = vld [vmem:[#allocation2] sm:$0xff]  ;;  %v335_v6 = vpack.c.bf16 %v67_v4, %v66_v2  ;;  %v63_v7 = vld [vmem:[#allocation2 + $0x8] sm:$0xff]  ;;  %v168_v9 = vld [vmem:[#allocation7 + $0x8] sm:$0xff]  ;;  %p432_p11 = scmp.lt.s32.totalorder %s279_s9, %s279_s9 }
  0x39   :  { %317 = vmatprep.mubr.msk.f32.mxu0 %vm75_vm0, %v62_v5  ;;  %332 = vmatprep.subr.bf16.mxu0 %v331_v3  ;;  %v339_v10 = vpack.c.bf16 %v168_v9, %v167_v8  ;;  %v169_v11 = vld [vmem:[#allocation7 + $0x10] sm:$0xff]  ;;  %v170_v12 = vld [vmem:[#allocation7 + $0x18] sm:$0xff] }
  0x3a   :  { %334 = vmatpush3.bf16.msra.mxu0 %v331_v3  ;;  %v343_v13 = vpack.c.bf16 %v170_v12, %v169_v11  ;;  %v291_v14 = vld [vmem:[%s572_s2] ss:$0 sm:$0xff] }
  0x3b   :  { %336 = vmatprep.subr.bf16.mxu0 %v335_v6  ;;  %340 = vmatprep.subr.bf16.mxu1 %v339_v10  ;;  %v294_v29 = vld [vmem:[%s574_s4] ss:$0 sm:$0xff]  ;;  %s427_s4 = scalar_lea.vmem %s279_s9, 256 }
  0x3c   :  { %342 = vmatpush3.bf16.msra.mxu1 %v339_v10  ;;  %p428_p10 = scmp.ne.s32.totalorder %s279_s9, %s427_s4  ;;  %p433_p12 = scmp.lt.s32.totalorder %s427_s4, %s427_s4 }
  0x3d   :  { %344 = vmatprep.subr.bf16.mxu1 %v343_v13 }
  0x3e   :  { %338 = vmatpush3.bf16.msra.mxu0 %v335_v6  ;;  %p434_p13 = por %p433_p12, %p432_p11 }
  0x40   :  { %346 = vmatpush3.bf16.msra.mxu1 %v343_v13  ;;  %p435_p0 = pnand %p434_p13, %p428_p10 }
  0x41   :  { %318 = vmatmul.mubr.msk.f32.vlgmr.msra.gmra.mrb[0].mxu0 %vm75_vm0, %v63_v7 }
 0x114   :  { %v319_v15 = vpop.f32.mrb[0].mxu0 }
 0x115   :  { %v154_v16 = vadd.f32 %v319_v15, %v291_v14  ;;  %v148_v17 = vpop.f32.mrb[1].mxu0 }
 0x116   :  { %v149_v18 = vadd.f32 %v291_v14, %v148_v17 }
 0x117   :  { %v160_v19 = vmul.f32 0.70710677, %v154_v16  ;;  %v158_v26 = vmul.f32 0.5, %v154_v16 }
 0x118   :  { %v159_v20 = vmul.f32 0.70710677, %v149_v18  ;;  %v157_v24 = vmul.f32 0.5, %v149_v18 }
 0x119   :  { %353 = verf.f32 %v160_v19 }
 0x11a   :  { %355 = verf.f32 %v159_v20 }
 0x123   :  { %v354_v21 = vpop.eup %353 }
 0x124   :  { %v356_v22 = vpop.eup %355  ;;  %v164_v23 = vadd.f32 1.0, %v354_v21 }
 0x125   :  { %v163_v25 = vadd.f32 1.0, %v356_v22 }
 0x126   :  { %v166_v28 = vmul.f32 %v164_v23, %v158_v26 }
 0x127   :  { %v165_v27 = vmul.f32 %v163_v25, %v157_v24 }
 0x129   :  { %328 = vmatprep.mubr.msk.f32.mxu1 %vm75_vm0, %v165_v27 }
 0x12a   :  { %329 = vmatmul.mubr.msk.f32.vlgmr.msra.gmra.mrb[0].mxu1 %vm75_vm0, %v166_v28 }
 0x1fd   :  { %v330_v30 = vpop.f32.mrb[0].mxu1 }
 0x1fe   :  { %v256_v31 = vadd.f32 %v330_v30, %v294_v29  ;;  %v250_v32 = vpop.f32.mrb[1].mxu1 }
 0x1ff   :  { %v251_v33 = vadd.f32 %v294_v29, %v250_v32 }
 0x200   :  { %v262_v34 = vmul.f32 0.70710677, %v256_v31  ;;  %v260_v38 = vmul.f32 0.5, %v256_v31 }
 0x201   :  { %v261_v35 = vmul.f32 0.70710677, %v251_v33  ;;  %v259_v40 = vmul.f32 0.5, %v251_v33 }
 0x202   :  { %357 = verf.f32 %v262_v34 }
 0x203   :  { %359 = verf.f32 %v261_v35 }
 0x20c   :  { %v358_v36 = vpop.eup %357 }
 0x20d   :  { %v360_v37 = vpop.eup %359  ;;  %v266_v39 = vadd.f32 1.0, %v358_v36 }
 0x20e   :  { %v265_v41 = vadd.f32 1.0, %v360_v37 }
 0x20f   :  { %v268_v42 = vmul.f32 %v266_v39, %v260_v38 }
 0x210   :  { %v267_v43 = vmul.f32 %v265_v41, %v259_v40 }
 0x211   :  { %v270_v44 = vadd.f32 %v268_v42, %v63_v7 }
 0x212   :  { %v269_v45 = vadd.f32 %v267_v43, %v62_v5 }
 0x213   :  { %272 = vst.msk [vmem:[#allocation8 + $0x8] sm:$0xff] %vm75_vm0, %v270_v44 }
 0x214   :  { %271 = vst.msk [vmem:[#allocation8] sm:$0xff] %vm75_vm0, %v269_v45 }
 0x215   :  { %438 = shalt.err (!%p435_p0)
}
 0x216   :  { %s439_s12 = scalar_lea.hbm %s575_s5, 256 }
 0x217   :  { %p440_p1 = scmp.ne.s32.totalorder %s575_s5, %s439_s12  ;;  %p443_p2 = scmp.lt.u32.totalorder %s439_s12, %s575_s5 }
 0x219   :  { %p445_p3 = pnand %p443_p2, %p440_p1 }
 0x21b   :  { %448 = shalt.err (!%p445_p3)
}
 0x21c   :  { %284 = dma.vmem_to_hbm [thread:$0]  %s279_s9, 256, %s575_s5, [#allocation4], %s457_s30, %s457_s30, %s458_s6  }
 0x21d   :  { %453 = dma.done.wait [#allocation4], 256  }
 0x21e   :  { %454 = vsyncadd [#allocation4], 4294967040 }
 0x21f   :  { %288 = vsyncpa [#allocation3], 1 }
 0x220   :  { %289 = vsyncpa [#allocation6], 1 }
 0x221   :  { %290 = vsyncpa [#allocation4], 1 }

</bundles_post_ra>
